<compile_context>
chip_gen: v7x
topology: tpu7x:2x2x1
jax: 0.10.0
libtpu: 0.0.40
codegen_flags: <defaults>
</compile_context>

<pallas_src>
import functools
import math

import jax
import jax.numpy as jnp
from jax import lax
from jax.experimental import pallas as pl
from jax.experimental.pallas import tpu as pltpu


# ---------------------------------------------------------------------------
# In-kernel math helpers
# ---------------------------------------------------------------------------
_SQRT1_2 = 0.7071067811865476


def _erf(x):
    # Abramowitz & Stegun 7.1.26 rational approximation (|err| < 1.5e-7, i.e.
    # at f32 epsilon), built only from ops with guaranteed Mosaic lowerings
    # (exp + elementary arithmetic + compare/select).
    ax = jnp.abs(x)
    t = 1.0 / (1.0 + 0.3275911 * ax)
    poly = t * (0.254829592 + t * (-0.284496736 + t * (1.421413741
               + t * (-1.453152027 + t * 1.061405429))))
    y = 1.0 - poly * jnp.exp(-ax * ax)
    return jnp.where(x >= 0.0, y, -y)


def _gelu(x, approximate):
    if approximate:
        # tanh-form GELU: tanh runs on the EUP slot and co-issues with MXU
        # work (flagged opt-in; slightly different numerics vs nn.GELU()).
        return jax.nn.gelu(x, approximate=True)
    # Exact erf-form GELU (nn.GELU default numerics to within ~1e-7).
    return 0.5 * x * (1.0 + _erf(x * _SQRT1_2))


# ---------------------------------------------------------------------------
# Kernel: one (tm, d_in) row tile x one d_hid chunk
# ---------------------------------------------------------------------------
def _ffn_kernel(x_ref, w1t_ref, b1_ref, w2t_ref, b2_ref, o_ref, acc_ref, *,
                mm_dtype, approximate):
    # x_ref:   (tm, d_in)  original activation dtype (cast here, in-kernel)
    # w1t_ref: (d_in, tk)  w1.T chunk, mm_dtype
    # b1_ref:  (1, tk)     float32
    # w2t_ref: (tk, d_in)  w2.T chunk, mm_dtype
    # b2_ref:  (1, d_in)   float32
    # o_ref:   (tm, d_in)  output, original dtype
    # acc_ref: (tm, d_in)  float32 accumulator scratch
    k = pl.program_id(1)

    @pl.when(k == 0)
    def _():
        acc_ref[...] = jnp.zeros_like(acc_ref)

    # Per-tile cast: cheap VALU work hidden under the MXU (no wrapper-side
    # HBM convert pass for the activations).
    x = x_ref[...].astype(mm_dtype)

    # Standard (M,K)x(K,N) dots on pre-transposed weights, f32 accumulation.
    h = jnp.dot(x, w1t_ref[...], preferred_element_type=jnp.float32)
    h = h + b1_ref[...]
    h = _gelu(h, approximate)
    # TODO(synk): training-mode dropout mask would be applied here.

    acc_ref[...] += jnp.dot(h.astype(mm_dtype), w2t_ref[...],
                            preferred_element_type=jnp.float32)

    @pl.when(k == pl.num_programs(1) - 1)
    def _():
        o_ref[...] = (acc_ref[...] + b2_ref[...]).astype(o_ref.dtype)


# ---------------------------------------------------------------------------
# Tiling heuristics
# ---------------------------------------------------------------------------
def _round_up(n: int, m: int) -> int:
    return ((n + m - 1) // m) * m


@functools.lru_cache(maxsize=None)
def _vmem_capacity_bytes() -> int:
    try:
        return int(pltpu.get_tpu_info().vmem_capacity_bytes)
    except Exception:
        return 64 * 2**20          # v7x-safe fallback


def _vmem_bytes(tm, d_in, tk, io_bytes, w_bytes, weight_bufs):
    weights = 2 * d_in * tk * w_bytes * weight_bufs
    biases = (tk + d_in) * 4 * weight_bufs
    io_tiles = 2 * 2 * tm * d_in * io_bytes            # x + out, 2 buffers
    hidden = 3 * tm * tk * 4 + tm * tk * w_bytes       # h / gelu(h) / cast
    acc = tm * d_in * 4
    return weights + biases + io_tiles + hidden + acc


def _spec(shape, index_map, buffered=None):
    if buffered is None:
        return pl.BlockSpec(shape, index_map)
    return pl.BlockSpec(shape, index_map, pipeline_mode=pl.Buffered(buffered))


# ---------------------------------------------------------------------------
# Wrapper
# ---------------------------------------------------------------------------
@functools.partial(
    jax.jit,
    static_argnames=("tm", "compute_dtype", "approximate_gelu",
                     "hidden_chunks", "single_buffer_weights"))
def _ffn_impl(x, w1, b1, w2, b2, *, tm, compute_dtype, approximate_gelu,
              hidden_chunks, single_buffer_weights):
    d_in = x.shape[-1]
    M = math.prod(x.shape[:-1])
    d_hid = w1.shape[0]

    mm_dtype = jnp.dtype(x.dtype if compute_dtype is None else compute_dtype)
    io_bytes = jnp.dtype(x.dtype).itemsize
    w_bytes = mm_dtype.itemsize

    cap = _vmem_capacity_bytes()
    budget = max(32 * 2**20, (cap * 3) // 4)

    # ---- hidden-dim chunking (second, "arbitrary" grid axis) --------------
    def _weight_step_bytes(tk, bufs):
        return (2 * d_in * tk * w_bytes + (tk + d_in) * 4) * bufs

    if hidden_chunks is not None:
        nc = int(hidden_chunks)
        if d_hid % nc or (nc > 1 and (d_hid // nc) % 128):
            raise ValueError("hidden_chunks must divide d_hid into "
                             "128-aligned chunks")
    else:
        nc = 1
        if _weight_step_bytes(d_hid, 1) > budget // 2:
            for cand in range(2, d_hid + 1):
                if d_hid % cand:
                    continue
                cand_tk = d_hid // cand
                if cand_tk % 128:
                    continue
                if _weight_step_bytes(cand_tk, 2) <= budget // 2:
                    nc = cand
                    break
            # TODO(synk): if no 128-aligned divisor of d_hid fits, we fall
            # back to the unchunked path (may exceed VMEM for huge, oddly
            # factored d_hid).
    tk = d_hid // nc
    weight_bufs = 1 if (nc == 1 and single_buffer_weights) else 2

    # ---- row tile ----------------------------------------------------------
    sub = max(8, 32 // min(io_bytes, w_bytes))          # sublane packing
    tm_req = int(tm) if tm is not None else (512 if cap >= 96 * 2**20 else 256)
    if M <= tm_req:
        tm_eff = M                  # single row block == full dim (no pad)
    else:
        tm_eff = _round_up(max(tm_req, sub), sub)
        while tm_eff > sub and _vmem_bytes(tm_eff, d_in, tk, io_bytes,
                                           w_bytes, weight_bufs) > budget:
            tm_eff = max(sub, _round_up(tm_eff // 2, sub))

    est = _vmem_bytes(tm_eff, d_in, tk, io_bytes, w_bytes, weight_bufs)
    vmem_limit = int(min(cap - 2 * 2**20, max(int(est * 1.25), 32 * 2**20)))

    # ---- one-time (amortized) operand prep --------------------------------
    x2d = x.reshape(M, d_in)                 # no pad, no dtype cast here
    w1t = w1.T.astype(mm_dtype)              # (d_in, d_hid)
    w2t = w2.T.astype(mm_dtype)              # (d_hid, d_in)
    b1r = b1.reshape(1, d_hid).astype(jnp.float32)
    b2r = b2.reshape(1, d_in).astype(jnp.float32)

    grid = (pl.cdiv(M, tm_eff), nc)          # ragged edge masked by Pallas
    const_buf = 1 if single_buffer_weights else None
    w_buf = const_buf if nc == 1 else None   # chunked weights need 2 buffers

    kernel = functools.partial(_ffn_kernel, mm_dtype=mm_dtype,
                               approximate=bool(approximate_gelu))

    cost = pl.CostEstimate(
        flops=int(4 * M * d_in * d_hid),
        transcendentals=int(M * d_hid),
        bytes_accessed=int(2 * M * d_in * io_bytes
                           + 2 * d_in * d_hid * w_bytes
                           + (d_in + d_hid) * 4))

    # NOTE: d_in (lane dim of the output tile) should ideally be a multiple
    # of 128 for unmasked stores / full MXU width; non-multiples still run
    # correctly (block == full dim) but at reduced store/MXU efficiency.
    out2d = pl.pallas_call(
        kernel,
        out_shape=jax.ShapeDtypeStruct((M, d_in), x.dtype),
        grid_spec=pltpu.PrefetchScalarGridSpec(
            num_scalar_prefetch=0,
            grid=grid,
            in_specs=[
                _spec((tm_eff, d_in), lambda i, k: (i, 0)),
                _spec((d_in, tk), lambda i, k: (0, k), w_buf),
                _spec((1, tk), lambda i, k: (0, k), w_buf),
                _spec((tk, d_in), lambda i, k: (k, 0), w_buf),
                _spec((1, d_in), lambda i, k: (0, 0), const_buf),
            ],
            out_specs=_spec((tm_eff, d_in), lambda i, k: (i, 0)),
            scratch_shapes=[pltpu.VMEM((tm_eff, d_in), jnp.float32)]),
        compiler_params=pltpu.CompilerParams(
            dimension_semantics=("parallel", "arbitrary"),
            vmem_limit_bytes=vmem_limit),
        cost_estimate=cost,
    )(x2d, w1t, b1r, w2t, b2r)

    return out2d.reshape(x.shape)


_SINGLE_BUFFER_OK = True


def positionwise_ffn(x, w1, b1, w2, b2, *, tm=None, compute_dtype=None,
                     approximate_gelu=False, hidden_chunks=None):
    """Fused w_2(dropout(gelu(w_1(x)))) forward pass (dropout = eval identity).

    x: (..., d_in); w1: (d_hid, d_in), b1: (d_hid,); w2: (d_in, d_hid),
    b2: (d_in,)  -- native nn.Linear parameter layouts.
    compute_dtype=jnp.bfloat16 runs the MXU at bf16 peak with f32 accumulation.
    """
    global _SINGLE_BUFFER_OK
    kwargs = dict(tm=tm, compute_dtype=compute_dtype,
                  approximate_gelu=approximate_gelu,
                  hidden_chunks=hidden_chunks)
    if _SINGLE_BUFFER_OK:
        try:
            return _ffn_impl(x, w1, b1, w2, b2,
                             single_buffer_weights=True, **kwargs)
        except Exception:
            # pl.Buffered(1) pipeline_mode not supported by this JAX build /
            # config -> fall back to default double buffering.
            _SINGLE_BUFFER_OK = False
    return _ffn_impl(x, w1, b1, w2, b2,
                     single_buffer_weights=False, **kwargs)


# ---------------------------------------------------------------------------
# Reference + self-test
# ---------------------------------------------------------------------------
def _reference(x, w1, b1, w2, b2):
    hp = lax.Precision.HIGHEST
    h = jnp.einsum("...d,hd->...h", x, w1, precision=hp) + b1
    h = jax.nn.gelu(h, approximate=False)
    return jnp.einsum("...h,dh->...d", h, w2, precision=hp) + b2


if __name__ == "__main__":
    B, S, d_in, d_hid = 2, 8, 32, 64
    key = jax.random.PRNGKey(0)
    kx, kw1, kb1, kw2, kb2 = jax.random.split(key, 5)

    x = jax.random.normal(kx, (B, S, d_in), dtype=jnp.float32)
    # nn.Linear layouts: weight (out, in), bias (out,).
    w1 = jax.random.normal(kw1, (d_hid, d_in), dtype=jnp.float32) * 0.05
    b1 = jax.random.normal(kb1, (d_hid,), dtype=jnp.float32) * 0.05
    w2 = jax.random.normal(kw2, (d_in, d_hid), dtype=jnp.float32) * 0.05
    b2 = jax.random.normal(kb2, (d_in,), dtype=jnp.float32) * 0.05

    ref = _reference(x, w1, b1, w2, b2)

    # 1) f32 path (matches the PyTorch module's eval-mode forward).
    out = positionwise_ffn(x, w1, b1, w2, b2)
    jax.block_until_ready(out)
    assert out.shape == (B, S, d_in)
    assert jnp.allclose(out, ref, atol=5e-3, rtol=5e-3), (
        f"f32 max err = {jnp.max(jnp.abs(out - ref))}")

    # 2) Ragged token count (M not a multiple of the row tile; no pad/slice).
    x_odd = x[:, :5]                                   # M = 10
    ref_odd = _reference(x_odd, w1, b1, w2, b2)
    out_odd = positionwise_ffn(x_odd, w1, b1, w2, b2)  # single full-M block
    jax.block_until_ready(out_odd)
    assert jnp.allclose(out_odd, ref_odd, atol=5e-3, rtol=5e-3)
    out_rag = positionwise_ffn(x_odd, w1, b1, w2, b2, tm=8)  # masked edge blk
    jax.block_until_ready(out_rag)
    assert jnp.allclose(out_rag, ref_odd, atol=5e-3, rtol=5e-3), (
        f"ragged max err = {jnp.max(jnp.abs(out_rag - ref_odd))}")

    # 3) bf16 MXU path (f32 accumulation), looser tolerance.
    out_bf16 = positionwise_ffn(x, w1, b1, w2, b2, compute_dtype=jnp.bfloat16)
    jax.block_until_ready(out_bf16)
    assert jnp.allclose(out_bf16, ref, atol=5e-2, rtol=5e-2), (
        f"bf16 max err = {jnp.max(jnp.abs(out_bf16 - ref))}")

    # 4) d_hid-chunked accumulation path (forced, 128-aligned chunks).
    d_in2, d_hid2 = 128, 256
    k2 = jax.random.split(jax.random.PRNGKey(1), 5)
    x2 = jax.random.normal(k2[0], (B, S, d_in2), dtype=jnp.float32)
    w12 = jax.random.normal(k2[1], (d_hid2, d_in2), dtype=jnp.float32) * 0.05
    b12 = jax.random.normal(k2[2], (d_hid2,), dtype=jnp.float32) * 0.05
    w22 = jax.random.normal(k2[3], (d_in2, d_hid2), dtype=jnp.float32) * 0.05
    b22 = jax.random.normal(k2[4], (d_in2,), dtype=jnp.float32) * 0.05
    out2 = positionwise_ffn(x2, w12, b12, w22, b22, hidden_chunks=2)
    jax.block_until_ready(out2)
    ref2 = _reference(x2, w12, b12, w22, b22)
    assert jnp.allclose(out2, ref2, atol=5e-3, rtol=5e-3), (
        f"chunked max err = {jnp.max(jnp.abs(out2 - ref2))}")

    # 5) tanh-GELU variant (EUP path); small numeric delta vs exact erf.
    out_tanh = positionwise_ffn(x, w1, b1, w2, b2, approximate_gelu=True)
    jax.block_until_ready(out_tanh)
    assert jnp.allclose(out_tanh, ref, atol=2e-2, rtol=2e-2)

    print("KERNEL_OK")
</pallas_src>

<mosaic_0001>
module attributes {stable_mosaic.version = 11 : i64} {
  func.func @_ffn_kernel(%arg0: i32, %arg1: i32, %arg2: memref<16x32xf32, #tpu.memory_space<vmem>>, %arg3: memref<32x64xf32, #tpu.memory_space<vmem>>, %arg4: memref<1x64xf32, #tpu.memory_space<vmem>>, %arg5: memref<64x32xf32, #tpu.memory_space<vmem>>, %arg6: memref<1x32xf32, #tpu.memory_space<vmem>>, %arg7: memref<16x32xf32, #tpu.memory_space<vmem>>, %arg8: memref<16x32xf32, #tpu.memory_space<vmem>>) attributes {dimension_semantics = [#tpu.dimension_semantics<parallel>, #tpu.dimension_semantics<arbitrary>], iteration_bounds = array<i64: 1, 1>, scalar_prefetch = 0 : i64, scratch_operands = 1 : i64, tpu.core_type = #tpu.core_type<tc>, window_params = [{transform_indices = @transform_0, window_bounds = array<i64: 16, 32>}, {pipeline_mode = #tpu.pipeline_mode<synchronous>, transform_indices = @transform_1, window_bounds = array<i64: 32, 64>}, {pipeline_mode = #tpu.pipeline_mode<synchronous>, transform_indices = @transform_2, window_bounds = array<i64: 1, 64>}, {pipeline_mode = #tpu.pipeline_mode<synchronous>, transform_indices = @transform_3, window_bounds = array<i64: 64, 32>}, {pipeline_mode = #tpu.pipeline_mode<synchronous>, transform_indices = @transform_4, window_bounds = array<i64: 1, 32>}, {transform_indices = @transform_5, window_bounds = array<i64: 16, 32>}]} {
    %c0_i32 = arith.constant 0 : i32
    %0 = arith.cmpi eq, %arg1, %c0_i32 : i32
    %1 = arith.extui %0 : i1 to i32
    %c0_i32_0 = arith.constant 0 : i32
    %2 = arith.cmpi ne, %1, %c0_i32_0 : i32
    scf.if %2 {
      %cst_30 = arith.constant 0.000000e+00 : f32
      %57 = vector.broadcast %cst_30 : f32 to vector<16x32xf32>
      %c0_31 = arith.constant 0 : index
      %c0_32 = arith.constant 0 : index
      %58 = vector.load %arg8[%c0_31, %c0_32] : memref<16x32xf32, #tpu.memory_space<vmem>>, vector<16x32xf32>
      tpu.vector_store %arg8[%c0_31, %c0_32], %57 {strides = array<i32>} : memref<16x32xf32, #tpu.memory_space<vmem>>, vector<16x32xf32>,
    } else {
    }
    %c0 = arith.constant 0 : index
    %c0_1 = arith.constant 0 : index
    %3 = vector.load %arg2[%c0, %c0_1] : memref<16x32xf32, #tpu.memory_space<vmem>>, vector<16x32xf32>
    %c0_2 = arith.constant 0 : index
    %c0_3 = arith.constant 0 : index
    %4 = vector.load %arg3[%c0_2, %c0_3] : memref<32x64xf32, #tpu.memory_space<vmem>>, vector<32x64xf32>
    %cst = arith.constant dense<0.000000e+00> : vector<16x64xf32>
    %5 = tpu.matmul %3, %4, %cst {dimension_numbers = #tpu.dot_dimension_numbers<[1], [0], [0], [1], [0, 0, 1, 1], [], []>} : vector<16x32xf32>, vector<32x64xf32>, vector<16x64xf32> -> vector<16x64xf32>
    %c0_4 = arith.constant 0 : index
    %c0_5 = arith.constant 0 : index
    %6 = vector.load %arg4[%c0_4, %c0_5] : memref<1x64xf32, #tpu.memory_space<vmem>>, vector<1x64xf32>
    %7 = vector.broadcast %6 : vector<1x64xf32> to vector<16x64xf32>
    %8 = arith.addf %5, %7 : vector<16x64xf32>
    %cst_6 = arith.constant 5.000000e-01 : f32
    %9 = vector.broadcast %cst_6 : f32 to vector<16x64xf32>
    %10 = arith.mulf %9, %8 : vector<16x64xf32>
    %cst_7 = arith.constant 0.707106769 : f32
    %11 = vector.broadcast %cst_7 : f32 to vector<16x64xf32>
    %12 = arith.mulf %8, %11 : vector<16x64xf32>
    %13 = math.absf %12 : vector<16x64xf32>
    %cst_8 = arith.constant 0.327591091 : f32
    %14 = vector.broadcast %cst_8 : f32 to vector<16x64xf32>
    %15 = arith.mulf %14, %13 : vector<16x64xf32>
    %cst_9 = arith.constant 1.000000e+00 : f32
    %16 = vector.broadcast %cst_9 : f32 to vector<16x64xf32>
    %17 = arith.addf %16, %15 : vector<16x64xf32>
    %cst_10 = arith.constant 1.000000e+00 : f32
    %18 = vector.broadcast %cst_10 : f32 to vector<16x64xf32>
    %19 = arith.divf %18, %17 : vector<16x64xf32>
    %cst_11 = arith.constant 1.06140542 : f32
    %20 = vector.broadcast %cst_11 : f32 to vector<16x64xf32>
    %21 = arith.mulf %19, %20 : vector<16x64xf32>
    %cst_12 = arith.constant -1.45315206 : f32
    %22 = vector.broadcast %cst_12 : f32 to vector<16x64xf32>
    %23 = arith.addf %22, %21 : vector<16x64xf32>
    %24 = arith.mulf %19, %23 : vector<16x64xf32>
    %cst_13 = arith.constant 1.42141378 : f32
    %25 = vector.broadcast %cst_13 : f32 to vector<16x64xf32>
    %26 = arith.addf %25, %24 : vector<16x64xf32>
    %27 = arith.mulf %19, %26 : vector<16x64xf32>
    %cst_14 = arith.constant -0.284496725 : f32
    %28 = vector.broadcast %cst_14 : f32 to vector<16x64xf32>
    %29 = arith.addf %28, %27 : vector<16x64xf32>
    %30 = arith.mulf %19, %29 : vector<16x64xf32>
    %cst_15 = arith.constant 0.254829586 : f32
    %31 = vector.broadcast %cst_15 : f32 to vector<16x64xf32>
    %32 = arith.addf %31, %30 : vector<16x64xf32>
    %33 = arith.mulf %19, %32 : vector<16x64xf32>
    %cst_16 = arith.constant 0.000000e+00 : f32
    %34 = vector.broadcast %cst_16 : f32 to vector<16x64xf32>
    %35 = arith.subf %34, %13 : vector<16x64xf32>
    %36 = arith.mulf %35, %13 : vector<16x64xf32>
    %37 = math.exp %36 : vector<16x64xf32>
    %38 = arith.mulf %33, %37 : vector<16x64xf32>
    %cst_17 = arith.constant 1.000000e+00 : f32
    %39 = vector.broadcast %cst_17 : f32 to vector<16x64xf32>
    %40 = arith.subf %39, %38 : vector<16x64xf32>
    %cst_18 = arith.constant 0.000000e+00 : f32
    %41 = vector.broadcast %cst_18 : f32 to vector<16x64xf32>
    %42 = arith.cmpf oge, %12, %41 : vector<16x64xf32>
    %cst_19 = arith.constant 0.000000e+00 : f32
    %43 = vector.broadcast %cst_19 : f32 to vector<16x64xf32>
    %44 = arith.subf %43, %40 : vector<16x64xf32>
    %45 = arith.select %42, %40, %44 : vector<16x64xi1>, vector<16x64xf32>
    %cst_20 = arith.constant 1.000000e+00 : f32
    %46 = vector.broadcast %cst_20 : f32 to vector<16x64xf32>
    %47 = arith.addf %46, %45 : vector<16x64xf32>
    %48 = arith.mulf %10, %47 : vector<16x64xf32>
    %c0_21 = arith.constant 0 : index
    %c0_22 = arith.constant 0 : index
    %49 = vector.load %arg8[%c0_21, %c0_22] : memref<16x32xf32, #tpu.memory_space<vmem>>, vector<16x32xf32>
    %c0_23 = arith.constant 0 : index
    %c0_24 = arith.constant 0 : index
    %50 = vector.load %arg5[%c0_23, %c0_24] : memref<64x32xf32, #tpu.memory_space<vmem>>, vector<64x32xf32>
    %cst_25 = arith.constant dense<0.000000e+00> : vector<16x32xf32>
    %51 = tpu.matmul %48, %50, %cst_25 {dimension_numbers = #tpu.dot_dimension_numbers<[1], [0], [0], [1], [0, 0, 1, 1], [], []>} : vector<16x64xf32>, vector<64x32xf32>, vector<16x32xf32> -> vector<16x32xf32>
    %52 = arith.addf %49, %51 : vector<16x32xf32>
    %c0_26 = arith.constant 0 : index
    %c0_27 = arith.constant 0 : index
    %53 = vector.load %arg8[%c0_26, %c0_27] : memref<16x32xf32, #tpu.memory_space<vmem>>, vector<16x32xf32>
    tpu.vector_store %arg8[%c0_26, %c0_27], %52 {strides = array<i32>} : memref<16x32xf32, #tpu.memory_space<vmem>>, vector<16x32xf32>,
    %c0_i32_28 = arith.constant 0 : i32
    %54 = arith.cmpi eq, %arg1, %c0_i32_28 : i32
    %55 = arith.extui %54 : i1 to i32
    %c0_i32_29 = arith.constant 0 : i32
    %56 = arith.cmpi ne, %55, %c0_i32_29 : i32
    scf.if %56 {
      %c0_30 = arith.constant 0 : index
      %c0_31 = arith.constant 0 : index
      %57 = vector.load %arg8[%c0_30, %c0_31] : memref<16x32xf32, #tpu.memory_space<vmem>>, vector<16x32xf32>
      %c0_32 = arith.constant 0 : index
      %c0_33 = arith.constant 0 : index
      %58 = vector.load %arg6[%c0_32, %c0_33] : memref<1x32xf32, #tpu.memory_space<vmem>>, vector<1x32xf32>
      %59 = vector.broadcast %58 : vector<1x32xf32> to vector<16x32xf32>
      %60 = arith.addf %57, %59 : vector<16x32xf32>
      %c0_34 = arith.constant 0 : index
      %c0_35 = arith.constant 0 : index
      %61 = vector.load %arg7[%c0_34, %c0_35] : memref<16x32xf32, #tpu.memory_space<vmem>>, vector<16x32xf32>
      tpu.vector_store %arg7[%c0_34, %c0_35], %60 {strides = array<i32>} : memref<16x32xf32, #tpu.memory_space<vmem>>, vector<16x32xf32>,
    } else {
    }
    return
  }
  func.func @transform_0(%arg0: i32, %arg1: i32) -> (i32, i32) {
    %c0_i32 = arith.constant 0 : i32
    %c0_i32_0 = arith.constant 0 : i32
    return %arg0, %c0_i32 : i32, i32
  }
  func.func @transform_1(%arg0: i32, %arg1: i32) -> (i32, i32) {
    %c0_i32 = arith.constant 0 : i32
    %c0_i32_0 = arith.constant 0 : i32
    return %c0_i32, %arg1 : i32, i32
  }
  func.func @transform_2(%arg0: i32, %arg1: i32) -> (i32, i32) {
    %c0_i32 = arith.constant 0 : i32
    %c0_i32_0 = arith.constant 0 : i32
    return %c0_i32, %arg1 : i32, i32
  }
  func.func @transform_3(%arg0: i32, %arg1: i32) -> (i32, i32) {
    %c0_i32 = arith.constant 0 : i32
    %c0_i32_0 = arith.constant 0 : i32
    return %arg1, %c0_i32 : i32, i32
  }
  func.func @transform_4(%arg0: i32, %arg1: i32) -> (i32, i32) {
    %c0_i32 = arith.constant 0 : i32
    %c0_i32_0 = arith.constant 0 : i32
    %c0_i32_1 = arith.constant 0 : i32
    return %c0_i32, %c0_i32_0 : i32, i32
  }
  func.func @transform_5(%arg0: i32, %arg1: i32) -> (i32, i32) {
    %c0_i32 = arith.constant 0 : i32
    %c0_i32_0 = arith.constant 0 : i32
    return %arg0, %c0_i32 : i32, i32
  }
}

module attributes {stable_mosaic.version = 11 : i64} {
  func.func @_ffn_kernel(%arg0: i32, %arg1: i32, %arg2: memref<16x32xf32, #tpu.memory_space<vmem>>, %arg3: memref<32x64xf32, #tpu.memory_space<vmem>>, %arg4: memref<1x64xf32, #tpu.memory_space<vmem>>, %arg5: memref<64x32xf32, #tpu.memory_space<vmem>>, %arg6: memref<1x32xf32, #tpu.memory_space<vmem>>, %arg7: memref<16x32xf32, #tpu.memory_space<vmem>>, %arg8: memref<16x32xf32, #tpu.memory_space<vmem>>) attributes {dimension_semantics = [#tpu.dimension_semantics<parallel>, #tpu.dimension_semantics<arbitrary>], iteration_bounds = array<i64: 1, 1>, scalar_prefetch = 0 : i64, scratch_operands = 1 : i64, tpu.core_type = #tpu.core_type<tc>, window_params = [{transform_indices = @transform_0, window_bounds = array<i64: 16, 32>}, {transform_indices = @transform_1, window_bounds = array<i64: 32, 64>}, {transform_indices = @transform_2, window_bounds = array<i64: 1, 64>}, {transform_indices = @transform_3, window_bounds = array<i64: 64, 32>}, {pipeline_mode = #tpu.pipeline_mode<synchronous>, transform_indices = @transform_4, window_bounds = array<i64: 1, 32>}, {transform_indices = @transform_5, window_bounds = array<i64: 16, 32>}]} {
    %c0_i32 = arith.constant 0 : i32
    %0 = arith.cmpi eq, %arg1, %c0_i32 : i32
    %1 = arith.extui %0 : i1 to i32
    %c0_i32_0 = arith.constant 0 : i32
    %2 = arith.cmpi ne, %1, %c0_i32_0 : i32
    scf.if %2 {
      %cst_30 = arith.constant 0.000000e+00 : f32
      %57 = vector.broadcast %cst_30 : f32 to vector<16x32xf32>
      %c0_31 = arith.constant 0 : index
      %c0_32 = arith.constant 0 : index
      %58 = vector.load %arg8[%c0_31, %c0_32] : memref<16x32xf32, #tpu.memory_space<vmem>>, vector<16x32xf32>
      tpu.vector_store %arg8[%c0_31, %c0_32], %57 {strides = array<i32>} : memref<16x32xf32, #tpu.memory_space<vmem>>, vector<16x32xf32>,
    } else {
    }
    %c0 = arith.constant 0 : index
    %c0_1 = arith.constant 0 : index
    %3 = vector.load %arg2[%c0, %c0_1] : memref<16x32xf32, #tpu.memory_space<vmem>>, vector<16x32xf32>
    %c0_2 = arith.constant 0 : index
    %c0_3 = arith.constant 0 : index
    %4 = vector.load %arg3[%c0_2, %c0_3] : memref<32x64xf32, #tpu.memory_space<vmem>>, vector<32x64xf32>
    %cst = arith.constant dense<0.000000e+00> : vector<16x64xf32>
    %5 = tpu.matmul %3, %4, %cst {dimension_numbers = #tpu.dot_dimension_numbers<[1], [0], [0], [1], [0, 0, 1, 1], [], []>} : vector<16x32xf32>, vector<32x64xf32>, vector<16x64xf32> -> vector<16x64xf32>
    %c0_4 = arith.constant 0 : index
    %c0_5 = arith.constant 0 : index
    %6 = vector.load %arg4[%c0_4, %c0_5] : memref<1x64xf32, #tpu.memory_space<vmem>>, vector<1x64xf32>
    %7 = vector.broadcast %6 : vector<1x64xf32> to vector<16x64xf32>
    %8 = arith.addf %5, %7 : vector<16x64xf32>
    %cst_6 = arith.constant 5.000000e-01 : f32
    %9 = vector.broadcast %cst_6 : f32 to vector<16x64xf32>
    %10 = arith.mulf %9, %8 : vector<16x64xf32>
    %cst_7 = arith.constant 0.707106769 : f32
    %11 = vector.broadcast %cst_7 : f32 to vector<16x64xf32>
    %12 = arith.mulf %8, %11 : vector<16x64xf32>
    %13 = math.absf %12 : vector<16x64xf32>
    %cst_8 = arith.constant 0.327591091 : f32
    %14 = vector.broadcast %cst_8 : f32 to vector<16x64xf32>
    %15 = arith.mulf %14, %13 : vector<16x64xf32>
    %cst_9 = arith.constant 1.000000e+00 : f32
    %16 = vector.broadcast %cst_9 : f32 to vector<16x64xf32>
    %17 = arith.addf %16, %15 : vector<16x64xf32>
    %cst_10 = arith.constant 1.000000e+00 : f32
    %18 = vector.broadcast %cst_10 : f32 to vector<16x64xf32>
    %19 = arith.divf %18, %17 : vector<16x64xf32>
    %cst_11 = arith.constant 1.06140542 : f32
    %20 = vector.broadcast %cst_11 : f32 to vector<16x64xf32>
    %21 = arith.mulf %19, %20 : vector<16x64xf32>
    %cst_12 = arith.constant -1.45315206 : f32
    %22 = vector.broadcast %cst_12 : f32 to vector<16x64xf32>
    %23 = arith.addf %22, %21 : vector<16x64xf32>
    %24 = arith.mulf %19, %23 : vector<16x64xf32>
    %cst_13 = arith.constant 1.42141378 : f32
    %25 = vector.broadcast %cst_13 : f32 to vector<16x64xf32>
    %26 = arith.addf %25, %24 : vector<16x64xf32>
    %27 = arith.mulf %19, %26 : vector<16x64xf32>
    %cst_14 = arith.constant -0.284496725 : f32
    %28 = vector.broadcast %cst_14 : f32 to vector<16x64xf32>
    %29 = arith.addf %28, %27 : vector<16x64xf32>
    %30 = arith.mulf %19, %29 : vector<16x64xf32>
    %cst_15 = arith.constant 0.254829586 : f32
    %31 = vector.broadcast %cst_15 : f32 to vector<16x64xf32>
    %32 = arith.addf %31, %30 : vector<16x64xf32>
    %33 = arith.mulf %19, %32 : vector<16x64xf32>
    %cst_16 = arith.constant 0.000000e+00 : f32
    %34 = vector.broadcast %cst_16 : f32 to vector<16x64xf32>
    %35 = arith.subf %34, %13 : vector<16x64xf32>
    %36 = arith.mulf %35, %13 : vector<16x64xf32>
    %37 = math.exp %36 : vector<16x64xf32>
    %38 = arith.mulf %33, %37 : vector<16x64xf32>
    %cst_17 = arith.constant 1.000000e+00 : f32
    %39 = vector.broadcast %cst_17 : f32 to vector<16x64xf32>
    %40 = arith.subf %39, %38 : vector<16x64xf32>
    %cst_18 = arith.constant 0.000000e+00 : f32
    %41 = vector.broadcast %cst_18 : f32 to vector<16x64xf32>
    %42 = arith.cmpf oge, %12, %41 : vector<16x64xf32>
    %cst_19 = arith.constant 0.000000e+00 : f32
    %43 = vector.broadcast %cst_19 : f32 to vector<16x64xf32>
    %44 = arith.subf %43, %40 : vector<16x64xf32>
    %45 = arith.select %42, %40, %44 : vector<16x64xi1>, vector<16x64xf32>
    %cst_20 = arith.constant 1.000000e+00 : f32
    %46 = vector.broadcast %cst_20 : f32 to vector<16x64xf32>
    %47 = arith.addf %46, %45 : vector<16x64xf32>
    %48 = arith.mulf %10, %47 : vector<16x64xf32>
    %c0_21 = arith.constant 0 : index
    %c0_22 = arith.constant 0 : index
    %49 = vector.load %arg8[%c0_21, %c0_22] : memref<16x32xf32, #tpu.memory_space<vmem>>, vector<16x32xf32>
    %c0_23 = arith.constant 0 : index
    %c0_24 = arith.constant 0 : index
    %50 = vector.load %arg5[%c0_23, %c0_24] : memref<64x32xf32, #tpu.memory_space<vmem>>, vector<64x32xf32>
    %cst_25 = arith.constant dense<0.000000e+00> : vector<16x32xf32>
    %51 = tpu.matmul %48, %50, %cst_25 {dimension_numbers = #tpu.dot_dimension_numbers<[1], [0], [0], [1], [0, 0, 1, 1], [], []>} : vector<16x64xf32>, vector<64x32xf32>, vector<16x32xf32> -> vector<16x32xf32>
    %52 = arith.addf %49, %51 : vector<16x32xf32>
    %c0_26 = arith.constant 0 : index
    %c0_27 = arith.constant 0 : index
    %53 = vector.load %arg8[%c0_26, %c0_27] : memref<16x32xf32, #tpu.memory_space<vmem>>, vector<16x32xf32>
    tpu.vector_store %arg8[%c0_26, %c0_27], %52 {strides = array<i32>} : memref<16x32xf32, #tpu.memory_space<vmem>>, vector<16x32xf32>,
    %c0_i32_28 = arith.constant 0 : i32
    %54 = arith.cmpi eq, %arg1, %c0_i32_28 : i32
    %55 = arith.extui %54 : i1 to i32
    %c0_i32_29 = arith.constant 0 : i32
    %56 = arith.cmpi ne, %55, %c0_i32_29 : i32
    scf.if %56 {
      %c0_30 = arith.constant 0 : index
      %c0_31 = arith.constant 0 : index
      %57 = vector.load %arg8[%c0_30, %c0_31] : memref<16x32xf32, #tpu.memory_space<vmem>>, vector<16x32xf32>
      %c0_32 = arith.constant 0 : index
      %c0_33 = arith.constant 0 : index
      %58 = vector.load %arg6[%c0_32, %c0_33] : memref<1x32xf32, #tpu.memory_space<vmem>>, vector<1x32xf32>
      %59 = vector.broadcast %58 : vector<1x32xf32> to vector<16x32xf32>
      %60 = arith.addf %57, %59 : vector<16x32xf32>
      %c0_34 = arith.constant 0 : index
      %c0_35 = arith.constant 0 : index
      %61 = vector.load %arg7[%c0_34, %c0_35] : memref<16x32xf32, #tpu.memory_space<vmem>>, vector<16x32xf32>
      tpu.vector_store %arg7[%c0_34, %c0_35], %60 {strides = array<i32>} : memref<16x32xf32, #tpu.memory_space<vmem>>, vector<16x32xf32>,
    } else {
    }
    return
  }
  func.func @transform_0(%arg0: i32, %arg1: i32) -> (i32, i32) {
    %c0_i32 = arith.constant 0 : i32
    %c0_i32_0 = arith.constant 0 : i32
    return %arg0, %c0_i32 : i32, i32
  }
  func.func @transform_1(%arg0: i32, %arg1: i32) -> (i32, i32) {
    %c0_i32 = arith.constant 0 : i32
    %c0_i32_0 = arith.constant 0 : i32
    return %c0_i32, %arg1 : i32, i32
  }
  func.func @transform_2(%arg0: i32, %arg1: i32) -> (i32, i32) {
    %c0_i32 = arith.constant 0 : i32
    %c0_i32_0 = arith.constant 0 : i32
    return %c0_i32, %arg1 : i32, i32
  }
  func.func @transform_3(%arg0: i32, %arg1: i32) -> (i32, i32) {
    %c0_i32 = arith.constant 0 : i32
    %c0_i32_0 = arith.constant 0 : i32
    return %arg1, %c0_i32 : i32, i32
  }
  func.func @transform_4(%arg0: i32, %arg1: i32) -> (i32, i32) {
    %c0_i32 = arith.constant 0 : i32
    %c0_i32_0 = arith.constant 0 : i32
    %c0_i32_1 = arith.constant 0 : i32
    return %c0_i32, %c0_i32_0 : i32, i32
  }
  func.func @transform_5(%arg0: i32, %arg1: i32) -> (i32, i32) {
    %c0_i32 = arith.constant 0 : i32
    %c0_i32_0 = arith.constant 0 : i32
    return %arg0, %c0_i32 : i32, i32
  }
}

</mosaic_0001>

<bundles_post_ra>
// kernel: _ffn_impl.1
= control target key start
LH: loop header
LB: loop body
LE: loop exit
PB: predicated region body
PF: predicated region fallthrough
CT: control target
= control target key end

     0   :  { %vm25_vm0 = vcmask 261120   ;;  %s519_s0 = inlined_call_operand.vmem [shape: f32[16,32], index: 0, kind: input, shape index: {}]   ;;  %s520_s1 = inlined_call_operand.vmem [shape: f32[32,64], index: 1, kind: input, shape index: {}]   ;;  %s521_s2 = inlined_call_operand.vmem [shape: f32[1,64], index: 2, kind: input, shape index: {}]   ;;  %s522_s3 = inlined_call_operand.vmem [shape: f32[64,32], index: 3, kind: input, shape index: {}]   ;;  %s523_s4 = inlined_call_operand.vmem [shape: f32[1,32], index: 4, kind: input, shape index: {}]   ;;  %s524_s5 = inlined_call_operand.hbm [shape: f32[16,32], index: 5, kind: output, shape index: {}]  }
   0x1   :  { %v30_v0 = vld [vmem:[%s520_s1] sm:$0xff]  ;;  %v31_v1 = vld [vmem:[%s520_s1 + $0x8] sm:$0xff]  ;;  %v32_v2 = vld [vmem:[%s520_s1 + $0x10] sm:$0xff] }
   0x2   :  { %v357_v3 = vpack.c.bf16 %v31_v1, %v30_v0  ;;  %v33_v4 = vld [vmem:[%s520_s1 + $0x18] sm:$0xff]  ;;  %v28_v5 = vld [vmem:[%s519_s0] sm:$0xff] }
   0x3   :  { %v361_v6 = vpack.c.bf16 %v33_v4, %v32_v2  ;;  %335 = vmatprep.mubr.msk.f32.mxu0 %vm25_vm0, %v28_v5 }
   0x4   :  { %10 = vsyncpa [#allocation4], 0  ;;  %358 = vmatprep.subr.bf16.mxu0 %v357_v3  ;;  %v29_v7 = vld [vmem:[%s519_s0 + $0x8] sm:$0xff]  ;;  %v179_v8 = vld [vmem:[%s522_s3] sm:$0xff]  ;;  %v417_v20 = vmov 0.0   ;;  %vm187_vm3 = vcmask 523264  }
   0x5   :  { %360 = vmatpush3.bf16.msra.mxu0 %v357_v3  ;;  %v180_v9 = vld [vmem:[%s522_s3 + $0x8] sm:$0xff]  ;;  %v181_v11 = vld [vmem:[%s522_s3 + $0x10] sm:$0xff]  ;;  %v182_v12 = vld [vmem:[%s522_s3 + $0x18] sm:$0xff]  ;;  %27 = vst.msk [vmem:[#allocation2 + $0x8] sm:$0xff] %vm25_vm0, %v417_v20  ;;  %s418_s21 = smov [#allocation3]  }
   0x6   :  { %362 = vmatprep.subr.bf16.mxu0 %v361_v6  ;;  %v365_v10 = vpack.c.bf16 %v180_v9, %v179_v8  ;;  %v369_v13 = vpack.c.bf16 %v182_v12, %v181_v11  ;;  %v183_v14 = vld [vmem:[%s522_s3 + $0x20] sm:$0xff]  ;;  %v184_v15 = vld [vmem:[%s522_s3 + $0x28] sm:$0xff]  ;;  %v185_v17 = vld [vmem:[%s522_s3 + $0x30] sm:$0xff]  ;;  %26 = vst.msk [vmem:[#allocation2] sm:$0xff] %vm25_vm0, %v417_v20  ;;  %s294_s22 = sshll.u32 %s418_s21, 4  ;;  %s295_s22 = int_to_ptr.vmem [resolvable:$true] %s294_s22 }
   0x7   :  { %v373_v16 = vpack.c.bf16 %v184_v15, %v183_v14  ;;  %v186_v18 = vld [vmem:[%s522_s3 + $0x38] sm:$0xff]  ;;  %v305_v21 = vld [vmem:[%s521_s2] ss:$0 sm:$0xff]  ;;  %s393_s23 = scalar_lea.vmem %s295_s22, 256  ;;  %p398_p1 = scmp.lt.s32.totalorder %s295_s22, %s295_s22 }
   0x8   :  { %366 = vmatprep.subr.bf16.mxu1 %v365_v10  ;;  %v377_v19 = vpack.c.bf16 %v186_v18, %v185_v17  ;;  %v310_v18 = vld [vmem:[%s523_s4] ss:$0 sm:$0xff]  ;;  %p394_p0 = scmp.ne.s32.totalorder %s295_s22, %s393_s23  ;;  %p399_p2 = scmp.lt.s32.totalorder %s393_s23, %s393_s23 }
   0x9   :  { %364 = vmatpush3.bf16.msra.mxu0 %v361_v6  ;;  %368 = vmatpush3.bf16.msra.mxu1 %v365_v10 }
   0xa   :  { %370 = vmatprep.subr.bf16.mxu1 %v369_v13  ;;  %p400_p3 = por %p399_p2, %p398_p1 }
   0xc   :  { %336 = vmatmul.mubr.msk.f32.vlgmr.msra.gmra.mrb[0].mxu0 %vm25_vm0, %v29_v7  ;;  %v178_v12 = vld [vmem:[#allocation2 + $0x8] sm:$0xff]  ;;  %p401_p4 = pnand %p400_p3, %p394_p0 }
   0xd   :  { %372 = vmatpush3.bf16.msra.mxu1 %v369_v13  ;;  %v177_v13 = vld [vmem:[#allocation2] sm:$0xff] }
   0xe   :  { %374 = vmatprep.subr.bf16.mxu1 %v373_v16 }
  0x11   :  { %376 = vmatpush3.bf16.msra.mxu1 %v373_v16 }
  0x12   :  { %378 = vmatprep.subr.bf16.mxu1 %v377_v19 }
  0x15   :  { %380 = vmatpush3.bf16.msra.mxu1 %v377_v19 }
  0xdf   :  { %v337_v22 = vpop.f32.mrb[0].mxu0 }
  0xe0   :  { %v120_v23 = vadd.f32 %v337_v22, %v305_v21  ;;  %v114_v24 = vpop.f32.mrb[1].mxu0 }
  0xe1   :  { %v115_v25 = vadd.f32 %v305_v21, %v114_v24 }
  0xe2   :  { %v126_v26 = vmul.f32 0.70710677, %v120_v23  ;;  %v124_v9 = vmul.f32 0.5, %v120_v23 }
  0xe3   :  { %v125_v27 = vmul.f32 0.70710677, %v115_v25  ;;  %v123_v7 = vmul.f32 0.5, %v115_v25 }
  0xe4   :  { %v128_v28 = vand.u32 2147483647, %v126_v26  ;;  %vm168_vm1 = vcmp.ge.f32.partialorder %v126_v26, 0.0 }
  0xe5   :  { %v127_v29 = vand.u32 2147483647, %v125_v27  ;;  %vm167_vm2 = vcmp.ge.f32.partialorder %v125_v27, 0.0 }
  0xe6   :  { %v130_v30 = vmul.f32 0.3275911, %v128_v28  ;;  %v156_v34 = vsub.f32 0.0, %v128_v28 }
  0xe7   :  { %v129_v31 = vmul.f32 0.3275911, %v127_v29  ;;  %v155_v35 = vsub.f32 0.0, %v127_v29 }
  0xe8   :  { %v132_v32 = vadd.f32 1.0, %v130_v30  ;;  %v158_v37 = vmul.f32 %v156_v34, %v128_v28 }
  0xe9   :  { %v131_v33 = vadd.f32 1.0, %v129_v31  ;;  %v157_v40 = vmul.f32 %v155_v35, %v127_v29 }
  0xea   :  { %385 = vrcp.f32 %v132_v32  ;;  %v161_v43 = vmul.f32 1.442695, %v158_v37 }
  0xeb   :  { %387 = vrcp.f32 %v131_v33  ;;  %v159_v46 = vmul.f32 1.442695, %v157_v40 }
  0xec   :  { %389 = vpow2.f32 %v161_v43 }
  0xed   :  { %391 = vpow2.f32 %v159_v46 }
  0xf4   :  { %v386_v36 = vpop.eup %385 }
  0xf5   :  { %v388_v38 = vpop.eup %387  ;;  %v138_v39 = vmul.f32 1.0614054, %v386_v36 }
  0xf6   :  { %v137_v41 = vmul.f32 1.0614054, %v388_v38  ;;  %v390_v59 = vpop.eup %389 }
  0xf7   :  { %v140_v42 = vadd.f32 -1.4531521, %v138_v39  ;;  %v392_v61 = vpop.eup %391 }
  0xf8   :  { %v139_v44 = vadd.f32 -1.4531521, %v137_v41 }
  0xf9   :  { %v142_v45 = vmul.f32 %v386_v36, %v140_v42 }
  0xfa   :  { %v141_v47 = vmul.f32 %v388_v38, %v139_v44 }
  0xfb   :  { %v144_v48 = vadd.f32 1.4214138, %v142_v45 }
  0xfc   :  { %v143_v49 = vadd.f32 1.4214138, %v141_v47 }
  0xfd   :  { %v146_v50 = vmul.f32 %v386_v36, %v144_v48 }
  0xfe   :  { %v145_v51 = vmul.f32 %v388_v38, %v143_v49 }
  0xff   :  { %v148_v52 = vadd.f32 -0.28449672, %v146_v50 }
 0x100   :  { %v147_v53 = vadd.f32 -0.28449672, %v145_v51 }
 0x101   :  { %v150_v54 = vmul.f32 %v386_v36, %v148_v52 }
 0x102   :  { %v149_v55 = vmul.f32 %v388_v38, %v147_v53 }
 0x103   :  { %v152_v56 = vadd.f32 0.2548296, %v150_v54 }
 0x104   :  { %v151_v57 = vadd.f32 0.2548296, %v149_v55 }
 0x105   :  { %v154_v58 = vmul.f32 %v386_v36, %v152_v56 }
 0x106   :  { %v153_v60 = vmul.f32 %v388_v38, %v151_v57 }
 0x107   :  { %v164_v62 = vmul.f32 %v390_v59, %v154_v58 }
 0x108   :  { %v163_v63 = vmul.f32 %v392_v61, %v153_v60 }
 0x109   :  { %v166_v0 = vsub.f32 1.0, %v164_v62 }
 0x10a   :  { %v165_v1 = vsub.f32 1.0, %v163_v63 }
 0x10b   :  { %v170_v2 = vsub.f32 0.0, %v166_v0 }
 0x10c   :  { %v169_v3 = vsub.f32 0.0, %v165_v1 }
 0x10d   :  { %v172_v4 = vsel %vm168_vm1, %v166_v0, %v170_v2 }
 0x10e   :  { %v174_v5 = vadd.f32 1.0, %v172_v4  ;;  %v171_v6 = vsel %vm167_vm2, %v165_v1, %v169_v3 }
 0x10f   :  { %v173_v8 = vadd.f32 1.0, %v171_v6 }
 0x110   :  { %v176_v11 = vmul.f32 %v174_v5, %v124_v9 }
 0x111   :  { %v175_v10 = vmul.f32 %v173_v8, %v123_v7 }
 0x113   :  { %354 = vmatprep.mubr.msk.f32.mxu1 %vm187_vm3, %v175_v10 }
 0x114   :  { %355 = vmatmul.mubr.msk.f32.vlgmr.msra.gmra.mrb[0].mxu1 %vm187_vm3, %v176_v11 }
 0x1e7   :  { %v356_v14 = vpop.f32.mrb[0].mxu1 }
 0x1e8   :  { %v270_v15 = vadd.f32 %v356_v14, %v178_v12  ;;  %v260_v16 = vpop.f32.mrb[1].mxu1 }
 0x1e9   :  { %v269_v17 = vadd.f32 %v260_v16, %v177_v13 }
 0x1ea   :  { %272 = vst.msk [vmem:[#allocation2 + $0x8] sm:$0xff] %vm25_vm0, %v270_v15 }
 0x1eb   :  { %271 = vst.msk [vmem:[#allocation2] sm:$0xff] %vm25_vm0, %v269_v17 }
 0x1f1   :  { %v277_v19 = vld [vmem:[#allocation2 + $0x8] sm:$0xff] }
 0x1f2   :  { %v276_v20 = vld [vmem:[#allocation2] sm:$0xff]  ;;  %v286_v21 = vadd.f32 %v310_v18, %v277_v19 }
 0x1f3   :  { %v285_v22 = vadd.f32 %v310_v18, %v276_v20 }
 0x1f4   :  { %288 = vst.msk [vmem:[#allocation3 + $0x8] sm:$0xff] %vm25_vm0, %v286_v21 }
 0x1f5   :  { %287 = vst.msk [vmem:[#allocation3] sm:$0xff] %vm25_vm0, %v285_v22 }
 0x1f6   :  { %404 = shalt.err (!%p401_p4)
}
 0x1f7   :  { %s405_s25 = scalar_lea.hbm %s524_s5, 256 }
 0x1f8   :  { %p406_p5 = scmp.ne.s32.totalorder %s524_s5, %s405_s25  ;;  %p409_p6 = scmp.lt.u32.totalorder %s405_s25, %s524_s5 }
 0x1fa   :  { %p411_p7 = pnand %p409_p6, %p406_p5 }
 0x1fc   :  { %414 = shalt.err (!%p411_p7)
}
 0x1fd   :  { %s419_s30 = smov 128   ;;  %s420_s1 = smov 8  }
 0x1fe   :  { %300 = dma.vmem_to_hbm [thread:$0]  %s295_s22, 256, %s524_s5, [#allocation4], %s419_s30, %s419_s30, %s420_s1  }
 0x1ff   :  { %415 = dma.done.wait [#allocation4], 256  }
 0x200   :  { %416 = vsyncadd [#allocation4], 4294967040 }
 0x201   :  { %304 = vsyncpa [#allocation4], 1 }

// kernel: _ffn_impl.1
= control target key start
LH: loop header
LB: loop body
LE: loop exit
PB: predicated region body
PF: predicated region fallthrough
CT: control target
= control target key end

     0   :  { %vm25_vm0 = vcmask 261120   ;;  %s519_s0 = inlined_call_operand.vmem [shape: f32[16,32], index: 0, kind: input, shape index: {}]   ;;  %s520_s1 = inlined_call_operand.vmem [shape: f32[32,64], index: 1, kind: input, shape index: {}]   ;;  %s521_s2 = inlined_call_operand.vmem [shape: f32[1,64], index: 2, kind: input, shape index: {}]   ;;  %s522_s3 = inlined_call_operand.vmem [shape: f32[64,32], index: 3, kind: input, shape index: {}]   ;;  %s523_s4 = inlined_call_operand.vmem [shape: f32[1,32], index: 4, kind: input, shape index: {}]   ;;  %s524_s5 = inlined_call_operand.hbm [shape: f32[16,32], index: 5, kind: output, shape index: {}]  }
   0x1   :  { %v30_v0 = vld [vmem:[%s520_s1] sm:$0xff]  ;;  %v31_v1 = vld [vmem:[%s520_s1 + $0x8] sm:$0xff]  ;;  %v32_v2 = vld [vmem:[%s520_s1 + $0x10] sm:$0xff] }
   0x2   :  { %v357_v3 = vpack.c.bf16 %v31_v1, %v30_v0  ;;  %v33_v4 = vld [vmem:[%s520_s1 + $0x18] sm:$0xff]  ;;  %v28_v5 = vld [vmem:[%s519_s0] sm:$0xff] }
   0x3   :  { %v361_v6 = vpack.c.bf16 %v33_v4, %v32_v2  ;;  %335 = vmatprep.mubr.msk.f32.mxu0 %vm25_vm0, %v28_v5 }
   0x4   :  { %10 = vsyncpa [#allocation4], 0  ;;  %358 = vmatprep.subr.bf16.mxu0 %v357_v3  ;;  %v29_v7 = vld [vmem:[%s519_s0 + $0x8] sm:$0xff]  ;;  %v179_v8 = vld [vmem:[%s522_s3] sm:$0xff]  ;;  %v417_v20 = vmov 0.0   ;;  %vm187_vm3 = vcmask 523264  }
   0x5   :  { %360 = vmatpush3.bf16.msra.mxu0 %v357_v3  ;;  %v180_v9 = vld [vmem:[%s522_s3 + $0x8] sm:$0xff]  ;;  %v181_v11 = vld [vmem:[%s522_s3 + $0x10] sm:$0xff]  ;;  %v182_v12 = vld [vmem:[%s522_s3 + $0x18] sm:$0xff]  ;;  %27 = vst.msk [vmem:[#allocation2 + $0x8] sm:$0xff] %vm25_vm0, %v417_v20  ;;  %s418_s21 = smov [#allocation3]  }
   0x6   :  { %362 = vmatprep.subr.bf16.mxu0 %v361_v6  ;;  %v365_v10 = vpack.c.bf16 %v180_v9, %v179_v8  ;;  %v369_v13 = vpack.c.bf16 %v182_v12, %v181_v11  ;;  %v183_v14 = vld [vmem:[%s522_s3 + $0x20] sm:$0xff]  ;;  %v184_v15 = vld [vmem:[%s522_s3 + $0x28] sm:$0xff]  ;;  %v185_v17 = vld [vmem:[%s522_s3 + $0x30] sm:$0xff]  ;;  %26 = vst.msk [vmem:[#allocation2] sm:$0xff] %vm25_vm0, %v417_v20  ;;  %s294_s22 = sshll.u32 %s418_s21, 4  ;;  %s295_s22 = int_to_ptr.vmem [resolvable:$true] %s294_s22 }
   0x7   :  { %v373_v16 = vpack.c.bf16 %v184_v15, %v183_v14  ;;  %v186_v18 = vld [vmem:[%s522_s3 + $0x38] sm:$0xff]  ;;  %v305_v21 = vld [vmem:[%s521_s2] ss:$0 sm:$0xff]  ;;  %s393_s23 = scalar_lea.vmem %s295_s22, 256  ;;  %p398_p1 = scmp.lt.s32.totalorder %s295_s22, %s295_s22 }
   0x8   :  { %366 = vmatprep.subr.bf16.mxu1 %v365_v10  ;;  %v377_v19 = vpack.c.bf16 %v186_v18, %v185_v17  ;;  %v310_v18 = vld [vmem:[%s523_s4] ss:$0 sm:$0xff]  ;;  %p394_p0 = scmp.ne.s32.totalorder %s295_s22, %s393_s23  ;;  %p399_p2 = scmp.lt.s32.totalorder %s393_s23, %s393_s23 }
   0x9   :  { %364 = vmatpush3.bf16.msra.mxu0 %v361_v6  ;;  %368 = vmatpush3.bf16.msra.mxu1 %v365_v10 }
   0xa   :  { %370 = vmatprep.subr.bf16.mxu1 %v369_v13  ;;  %p400_p3 = por %p399_p2, %p398_p1 }
   0xc   :  { %336 = vmatmul.mubr.msk.f32.vlgmr.msra.gmra.mrb[0].mxu0 %vm25_vm0, %v29_v7  ;;  %v178_v12 = vld [vmem:[#allocation2 + $0x8] sm:$0xff]  ;;  %p401_p4 = pnand %p400_p3, %p394_p0 }
   0xd   :  { %372 = vmatpush3.bf16.msra.mxu1 %v369_v13  ;;  %v177_v13 = vld [vmem:[#allocation2] sm:$0xff] }
   0xe   :  { %374 = vmatprep.subr.bf16.mxu1 %v373_v16 }
  0x11   :  { %376 = vmatpush3.bf16.msra.mxu1 %v373_v16 }
  0x12   :  { %378 = vmatprep.subr.bf16.mxu1 %v377_v19 }
  0x15   :  { %380 = vmatpush3.bf16.msra.mxu1 %v377_v19 }
  0xdf   :  { %v337_v22 = vpop.f32.mrb[0].mxu0 }
  0xe0   :  { %v120_v23 = vadd.f32 %v337_v22, %v305_v21  ;;  %v114_v24 = vpop.f32.mrb[1].mxu0 }
  0xe1   :  { %v115_v25 = vadd.f32 %v305_v21, %v114_v24 }
  0xe2   :  { %v126_v26 = vmul.f32 0.70710677, %v120_v23  ;;  %v124_v9 = vmul.f32 0.5, %v120_v23 }
  0xe3   :  { %v125_v27 = vmul.f32 0.70710677, %v115_v25  ;;  %v123_v7 = vmul.f32 0.5, %v115_v25 }
  0xe4   :  { %v128_v28 = vand.u32 2147483647, %v126_v26  ;;  %vm168_vm1 = vcmp.ge.f32.partialorder %v126_v26, 0.0 }
  0xe5   :  { %v127_v29 = vand.u32 2147483647, %v125_v27  ;;  %vm167_vm2 = vcmp.ge.f32.partialorder %v125_v27, 0.0 }
  0xe6   :  { %v130_v30 = vmul.f32 0.3275911, %v128_v28  ;;  %v156_v34 = vsub.f32 0.0, %v128_v28 }
  0xe7   :  { %v129_v31 = vmul.f32 0.3275911, %v127_v29  ;;  %v155_v35 = vsub.f32 0.0, %v127_v29 }
  0xe8   :  { %v132_v32 = vadd.f32 1.0, %v130_v30  ;;  %v158_v37 = vmul.f32 %v156_v34, %v128_v28 }
  0xe9   :  { %v131_v33 = vadd.f32 1.0, %v129_v31  ;;  %v157_v40 = vmul.f32 %v155_v35, %v127_v29 }
  0xea   :  { %385 = vrcp.f32 %v132_v32  ;;  %v161_v43 = vmul.f32 1.442695, %v158_v37 }
  0xeb   :  { %387 = vrcp.f32 %v131_v33  ;;  %v159_v46 = vmul.f32 1.442695, %v157_v40 }
  0xec   :  { %389 = vpow2.f32 %v161_v43 }
  0xed   :  { %391 = vpow2.f32 %v159_v46 }
  0xf4   :  { %v386_v36 = vpop.eup %385 }
  0xf5   :  { %v388_v38 = vpop.eup %387  ;;  %v138_v39 = vmul.f32 1.0614054, %v386_v36 }
  0xf6   :  { %v137_v41 = vmul.f32 1.0614054, %v388_v38  ;;  %v390_v59 = vpop.eup %389 }
  0xf7   :  { %v140_v42 = vadd.f32 -1.4531521, %v138_v39  ;;  %v392_v61 = vpop.eup %391 }
  0xf8   :  { %v139_v44 = vadd.f32 -1.4531521, %v137_v41 }
  0xf9   :  { %v142_v45 = vmul.f32 %v386_v36, %v140_v42 }
  0xfa   :  { %v141_v47 = vmul.f32 %v388_v38, %v139_v44 }
  0xfb   :  { %v144_v48 = vadd.f32 1.4214138, %v142_v45 }
  0xfc   :  { %v143_v49 = vadd.f32 1.4214138, %v141_v47 }
  0xfd   :  { %v146_v50 = vmul.f32 %v386_v36, %v144_v48 }
  0xfe   :  { %v145_v51 = vmul.f32 %v388_v38, %v143_v49 }
  0xff   :  { %v148_v52 = vadd.f32 -0.28449672, %v146_v50 }
 0x100   :  { %v147_v53 = vadd.f32 -0.28449672, %v145_v51 }
 0x101   :  { %v150_v54 = vmul.f32 %v386_v36, %v148_v52 }
 0x102   :  { %v149_v55 = vmul.f32 %v388_v38, %v147_v53 }
 0x103   :  { %v152_v56 = vadd.f32 0.2548296, %v150_v54 }
 0x104   :  { %v151_v57 = vadd.f32 0.2548296, %v149_v55 }
 0x105   :  { %v154_v58 = vmul.f32 %v386_v36, %v152_v56 }
 0x106   :  { %v153_v60 = vmul.f32 %v388_v38, %v151_v57 }
 0x107   :  { %v164_v62 = vmul.f32 %v390_v59, %v154_v58 }
 0x108   :  { %v163_v63 = vmul.f32 %v392_v61, %v153_v60 }
 0x109   :  { %v166_v0 = vsub.f32 1.0, %v164_v62 }
 0x10a   :  { %v165_v1 = vsub.f32 1.0, %v163_v63 }
 0x10b   :  { %v170_v2 = vsub.f32 0.0, %v166_v0 }
 0x10c   :  { %v169_v3 = vsub.f32 0.0, %v165_v1 }
 0x10d   :  { %v172_v4 = vsel %vm168_vm1, %v166_v0, %v170_v2 }
 0x10e   :  { %v174_v5 = vadd.f32 1.0, %v172_v4  ;;  %v171_v6 = vsel %vm167_vm2, %v165_v1, %v169_v3 }
 0x10f   :  { %v173_v8 = vadd.f32 1.0, %v171_v6 }
 0x110   :  { %v176_v11 = vmul.f32 %v174_v5, %v124_v9 }
 0x111   :  { %v175_v10 = vmul.f32 %v173_v8, %v123_v7 }
 0x113   :  { %354 = vmatprep.mubr.msk.f32.mxu1 %vm187_vm3, %v175_v10 }
 0x114   :  { %355 = vmatmul.mubr.msk.f32.vlgmr.msra.gmra.mrb[0].mxu1 %vm187_vm3, %v176_v11 }
 0x1e7   :  { %v356_v14 = vpop.f32.mrb[0].mxu1 }
 0x1e8   :  { %v270_v15 = vadd.f32 %v356_v14, %v178_v12  ;;  %v260_v16 = vpop.f32.mrb[1].mxu1 }
 0x1e9   :  { %v269_v17 = vadd.f32 %v260_v16, %v177_v13 }
 0x1ea   :  { %272 = vst.msk [vmem:[#allocation2 + $0x8] sm:$0xff] %vm25_vm0, %v270_v15 }
 0x1eb   :  { %271 = vst.msk [vmem:[#allocation2] sm:$0xff] %vm25_vm0, %v269_v17 }
 0x1f1   :  { %v277_v19 = vld [vmem:[#allocation2 + $0x8] sm:$0xff] }
 0x1f2   :  { %v276_v20 = vld [vmem:[#allocation2] sm:$0xff]  ;;  %v286_v21 = vadd.f32 %v310_v18, %v277_v19 }
 0x1f3   :  { %v285_v22 = vadd.f32 %v310_v18, %v276_v20 }
 0x1f4   :  { %288 = vst.msk [vmem:[#allocation3 + $0x8] sm:$0xff] %vm25_vm0, %v286_v21 }
 0x1f5   :  { %287 = vst.msk [vmem:[#allocation3] sm:$0xff] %vm25_vm0, %v285_v22 }
 0x1f6   :  { %404 = shalt.err (!%p401_p4)
}
 0x1f7   :  { %s405_s25 = scalar_lea.hbm %s524_s5, 256 }
 0x1f8   :  { %p406_p5 = scmp.ne.s32.totalorder %s524_s5, %s405_s25  ;;  %p409_p6 = scmp.lt.u32.totalorder %s405_s25, %s524_s5 }
 0x1fa   :  { %p411_p7 = pnand %p409_p6, %p406_p5 }
 0x1fc   :  { %414 = shalt.err (!%p411_p7)
}
 0x1fd   :  { %s419_s30 = smov 128   ;;  %s420_s1 = smov 8  }
 0x1fe   :  { %300 = dma.vmem_to_hbm [thread:$0]  %s295_s22, 256, %s524_s5, [#allocation4], %s419_s30, %s419_s30, %s420_s1  }
 0x1ff   :  { %415 = dma.done.wait [#allocation4], 256  }
 0x200   :  { %416 = vsyncadd [#allocation4], 4294967040 }
 0x201   :  { %304 = vsyncpa [#allocation4], 1 }

</bundles_post_ra>
